<compile_context>
chip_gen: v5e
topology: v5e:2x2
jax: 0.10.0
libtpu: 0.0.40
codegen_flags: <defaults>
</compile_context>

<pallas_src>
import functools

import jax
import jax.numpy as jnp
from jax.experimental import pallas as pl
from jax.experimental.pallas import tpu as pltpu


def _round_up(a, b):
    return (a + b - 1) // b * b


def _upsample_kernel(w_ref, b_ref, x_ref, o_ref, *, lane_width, tap_offsets):
    """One batch image of the phase-decomposed ConvTranspose2d GEMM.

    w_ref: (T, R, Cin_p)  per-tap weight slabs, VMEM resident
    b_ref: (R, 1)         per-output-row bias
    x_ref: (Cin_p, F)     halo-padded, Wp-stride-flattened image
    o_ref: (R, Lp)        per-phase output, Lp % 128 == 0 -> lane-dense stores
    """
    acc = None
    for t, off in enumerate(tap_offsets):          # static unroll over Jh*Jw taps
        part = jnp.dot(w_ref[t], x_ref[:, off:off + lane_width],
                       preferred_element_type=jnp.float32)
        acc = part if acc is None else acc + part
    # Bias epilogue on the VPU (hides under MXU slack; no ones-row in the GEMM).
    o_ref[...] = acc + b_ref[...]


def upsample_forward(x_nchw, weight, bias, stride):
    """ConvTranspose2d(input_dim, output_dim, kernel, stride), padding=0.

    x_nchw: (N, Cin, H, W); weight: (Cin, Cout, kH, kW); bias: (Cout,)
    returns (N, Cout, Hout, Wout), Hout = (H-1)*stride + kH, etc.
    """
    N, Cin, H, W = x_nchw.shape
    Cin_w, Cout, kH, kW = weight.shape
    assert Cin == Cin_w
    s = int(stride)
    Hout = (H - 1) * s + kH
    Wout = (W - 1) * s + kW
    Jh = -(-kH // s)                    # ceil(kH / s): taps per phase (rows)
    Jw = -(-kW // s)                    # ceil(kW / s): taps per phase (cols)
    Hm = H - 1 + Jh                     # per-phase padded output rows
    Wm = W - 1 + Jw                     # per-phase padded output cols
    Hp = H + 2 * (Jh - 1)               # halo-padded input rows
    Wp = W + 2 * (Jw - 1)               # halo-padded input cols (= row stride)
    T = Jh * Jw                         # taps per output phase
    R = s * s * Cout                    # GEMM output rows (phase, phase, Cout)
    Cin_p = _round_up(Cin, 8)           # sublane-aligned contraction depth

    Lcols = Hm * Wp                     # columns consumed by the epilogue
    Lp = _round_up(Lcols, 128)          # lane-dense GEMM / store width
    max_off = (Jh - 1) * Wp + (Jw - 1)
    F = max_off + Lp                    # flat length so every tap slice fits

    x = x_nchw.astype(jnp.float32)
    w = weight.astype(jnp.float32)
    b = bias.astype(jnp.float32)

    # One small halo+channel pad of the input, a free reshape, and a tail pad.
    xpad = jnp.pad(x, ((0, 0), (0, Cin_p - Cin),
                       (Jh - 1, Jh - 1), (Jw - 1, Jw - 1)))   # (N, Cin_p, Hp, Wp)
    xflat = jnp.pad(xpad.reshape(N, Cin_p, Hp * Wp),
                    ((0, 0), (0, 0), (0, F - Hp * Wp)))       # (N, Cin_p, F)

    # Phase/tap-decomposed weights: w3[t, (p, q, co), ci].
    w_pad = jnp.pad(w, ((0, Cin_p - Cin), (0, 0),
                        (0, s * Jh - kH), (0, s * Jw - kW)))
    w_r = w_pad.reshape(Cin_p, Cout, Jh, s, Jw, s)            # [ci,co,j,p,jw,q]
    w3 = jnp.transpose(w_r, (2, 4, 3, 5, 1, 0)).reshape(T, R, Cin_p)
    brow = jnp.tile(b, s * s).reshape(R, 1)                   # bias per GEMM row

    # Tap t = j*Jw + jw reads xpad shifted by (Jh-1-j, Jw-1-jw): a contiguous
    # slice of the Wp-strided flattening (valid columns never wrap rows).
    tap_offsets = tuple((Jh - 1 - j) * Wp + (Jw - 1 - jw)
                        for j in range(Jh) for jw in range(Jw))

    kernel = functools.partial(_upsample_kernel, lane_width=Lp,
                               tap_offsets=tap_offsets)

    # Per-step VMEM footprint: resident weights/bias + double-buffered x/out.
    per_step_bytes = 4 * (T * R * Cin_p + R + 2 * Cin_p * F + 2 * R * Lp)
    vmem_limit = int(min(100 * 2**20, max(8 * 2**20, 2 * per_step_bytes)))

    out = pl.pallas_call(
        kernel,
        out_shape=jax.ShapeDtypeStruct((N, R, Lp), jnp.float32),
        grid_spec=pltpu.PrefetchScalarGridSpec(
            num_scalar_prefetch=0,
            grid=(N,),                                         # parallel over batch
            in_specs=[
                pl.BlockSpec((T, R, Cin_p), lambda n: (0, 0, 0)),   # resident W
                pl.BlockSpec((R, 1), lambda n: (0, 0)),             # resident bias
                pl.BlockSpec((None, Cin_p, F), lambda n: (n, 0, 0)),  # image n
            ],
            out_specs=pl.BlockSpec((None, R, Lp), lambda n: (n, 0, 0)),
        ),
        compiler_params=pltpu.CompilerParams(
            dimension_semantics=("parallel",),   # shards over both TCs on v7x
            vmem_limit_bytes=vmem_limit),
    )(w3, brow, xflat)

    # Phase interleave straight into NCHW (single XLA pass over the output).
    # TODO(synk): fold this interleave into the kernel epilogue; it needs
    # strided non-lane-dense stores, so it is left to XLA for now.
    y = out[:, :, :Hm * Wp].reshape(N, s, s, Cout, Hm, Wp)[..., :Wm]
    y = jnp.transpose(y, (0, 3, 4, 1, 5, 2))                  # (N,Cout,Hm,s,Wm,s)
    return y.reshape(N, Cout, Hm * s, Wm * s)[:, :, :Hout, :Wout]


def _reference_forward(x_nchw, weight, bias, stride):
    """Pure-JAX reference with identical ConvTranspose2d semantics."""
    N, Cin, H, W = x_nchw.shape
    _, Cout, kH, kW = weight.shape
    s = stride
    Hout = (H - 1) * s + kH
    Wout = (W - 1) * s + kW
    y = jnp.einsum('nchw,coyz->nhwyzo', x_nchw, weight)
    out = jnp.zeros((N, Hout, Wout, Cout), jnp.float32)
    for kh in range(kH):
        for kw in range(kW):
            out = out.at[:, kh:kh + s * H:s, kw:kw + s * W:s, :].add(
                y[:, :, :, kh, kw, :])
    out = out + bias[None, None, None, :]
    return jnp.transpose(out, (0, 3, 1, 2))


if __name__ == "__main__":
    # Module config: Upsample(input_dim=4, output_dim=8, kernel=3, stride=2)
    input_dim, output_dim, kernel, stride = 4, 8, 3, 2
    N, H, W = 2, 16, 16

    key = jax.random.PRNGKey(0)
    kx, kw, kb = jax.random.split(key, 3)

    x = jax.random.normal(kx, (N, input_dim, H, W), dtype=jnp.float32)
    bound = 1.0 / (input_dim * kernel * kernel) ** 0.5
    weight = jax.random.uniform(kw, (input_dim, output_dim, kernel, kernel),
                                minval=-bound, maxval=bound, dtype=jnp.float32)
    bias = jax.random.uniform(kb, (output_dim,), minval=-bound, maxval=bound,
                              dtype=jnp.float32)

    fwd = jax.jit(upsample_forward, static_argnums=(3,))
    out = jax.block_until_ready(fwd(x, weight, bias, stride))

    expected_shape = (N, output_dim, (H - 1) * stride + kernel,
                      (W - 1) * stride + kernel)
    assert out.shape == expected_shape, (out.shape, expected_shape)

    ref = jax.block_until_ready(_reference_forward(x, weight, bias, stride))
    max_err = float(jnp.max(jnp.abs(out - ref)))
    assert max_err < 1e-3, f"max abs error {max_err}"

    print("KERNEL_OK")
</pallas_src>

<mosaic_0001>
module attributes {stable_mosaic.version = 11 : i64} {
  func.func @_upsample_kernel(%arg0: i32, %arg1: memref<4x32x8xf32, #tpu.memory_space<vmem>>, %arg2: memref<32x1xf32, #tpu.memory_space<vmem>>, %arg3: memref<1x8x403xf32, #tpu.memory_space<vmem>>, %arg4: memref<1x32x384xf32, #tpu.memory_space<vmem>>) attributes {dimension_semantics = [#tpu.dimension_semantics<parallel>], iteration_bounds = array<i64: 2>, scalar_prefetch = 0 : i64, scratch_operands = 0 : i64, tpu.core_type = #tpu.core_type<tc>, window_params = [{pipeline_mode = #tpu.pipeline_mode<synchronous>, transform_indices = @transform_0, window_bounds = array<i64: 4, 32, 8>}, {pipeline_mode = #tpu.pipeline_mode<synchronous>, transform_indices = @transform_1, window_bounds = array<i64: 32, 1>}, {transform_indices = @transform_2, window_bounds = array<i64: 1, 8, 403>}, {transform_indices = @transform_3, window_bounds = array<i64: 1, 32, 384>}]} {
    %c0 = arith.constant 0 : index
    %c0_0 = arith.constant 0 : index
    %c0_1 = arith.constant 0 : index
    %0 = vector.load %arg1[%c0, %c0_0, %c0_1] : memref<4x32x8xf32, #tpu.memory_space<vmem>>, vector<1x32x8xf32>
    %1 = vector.shape_cast %0 : vector<1x32x8xf32> to vector<32x8xf32>
    %c0_2 = arith.constant 0 : index
    %c0_3 = arith.constant 0 : index
    %c19 = arith.constant 19 : index
    %2 = vector.load %arg3[%c0_2, %c0_3, %c19] : memref<1x8x403xf32, #tpu.memory_space<vmem>>, vector<1x8x384xf32>
    %3 = vector.shape_cast %2 : vector<1x8x384xf32> to vector<8x384xf32>
    %cst = arith.constant dense<0.000000e+00> : vector<32x384xf32>
    %4 = tpu.matmul %1, %3, %cst {dimension_numbers = #tpu.dot_dimension_numbers<[1], [0], [0], [1], [0, 0, 1, 1], [], []>} : vector<32x8xf32>, vector<8x384xf32>, vector<32x384xf32> -> vector<32x384xf32>
    %c1 = arith.constant 1 : index
    %c0_4 = arith.constant 0 : index
    %c0_5 = arith.constant 0 : index
    %5 = vector.load %arg1[%c1, %c0_4, %c0_5] : memref<4x32x8xf32, #tpu.memory_space<vmem>>, vector<1x32x8xf32>
    %6 = vector.shape_cast %5 : vector<1x32x8xf32> to vector<32x8xf32>
    %c0_6 = arith.constant 0 : index
    %c0_7 = arith.constant 0 : index
    %c18 = arith.constant 18 : index
    %7 = vector.load %arg3[%c0_6, %c0_7, %c18] : memref<1x8x403xf32, #tpu.memory_space<vmem>>, vector<1x8x384xf32>
    %8 = vector.shape_cast %7 : vector<1x8x384xf32> to vector<8x384xf32>
    %cst_8 = arith.constant dense<0.000000e+00> : vector<32x384xf32>
    %9 = tpu.matmul %6, %8, %cst_8 {dimension_numbers = #tpu.dot_dimension_numbers<[1], [0], [0], [1], [0, 0, 1, 1], [], []>} : vector<32x8xf32>, vector<8x384xf32>, vector<32x384xf32> -> vector<32x384xf32>
    %10 = arith.addf %4, %9 : vector<32x384xf32>
    %c2 = arith.constant 2 : index
    %c0_9 = arith.constant 0 : index
    %c0_10 = arith.constant 0 : index
    %11 = vector.load %arg1[%c2, %c0_9, %c0_10] : memref<4x32x8xf32, #tpu.memory_space<vmem>>, vector<1x32x8xf32>
    %12 = vector.shape_cast %11 : vector<1x32x8xf32> to vector<32x8xf32>
    %c0_11 = arith.constant 0 : index
    %c0_12 = arith.constant 0 : index
    %c1_13 = arith.constant 1 : index
    %13 = vector.load %arg3[%c0_11, %c0_12, %c1_13] : memref<1x8x403xf32, #tpu.memory_space<vmem>>, vector<1x8x384xf32>
    %14 = vector.shape_cast %13 : vector<1x8x384xf32> to vector<8x384xf32>
    %cst_14 = arith.constant dense<0.000000e+00> : vector<32x384xf32>
    %15 = tpu.matmul %12, %14, %cst_14 {dimension_numbers = #tpu.dot_dimension_numbers<[1], [0], [0], [1], [0, 0, 1, 1], [], []>} : vector<32x8xf32>, vector<8x384xf32>, vector<32x384xf32> -> vector<32x384xf32>
    %16 = arith.addf %10, %15 : vector<32x384xf32>
    %c3 = arith.constant 3 : index
    %c0_15 = arith.constant 0 : index
    %c0_16 = arith.constant 0 : index
    %17 = vector.load %arg1[%c3, %c0_15, %c0_16] : memref<4x32x8xf32, #tpu.memory_space<vmem>>, vector<1x32x8xf32>
    %18 = vector.shape_cast %17 : vector<1x32x8xf32> to vector<32x8xf32>
    %c0_17 = arith.constant 0 : index
    %c0_18 = arith.constant 0 : index
    %c0_19 = arith.constant 0 : index
    %19 = vector.load %arg3[%c0_17, %c0_18, %c0_19] : memref<1x8x403xf32, #tpu.memory_space<vmem>>, vector<1x8x384xf32>
    %20 = vector.shape_cast %19 : vector<1x8x384xf32> to vector<8x384xf32>
    %cst_20 = arith.constant dense<0.000000e+00> : vector<32x384xf32>
    %21 = tpu.matmul %18, %20, %cst_20 {dimension_numbers = #tpu.dot_dimension_numbers<[1], [0], [0], [1], [0, 0, 1, 1], [], []>} : vector<32x8xf32>, vector<8x384xf32>, vector<32x384xf32> -> vector<32x384xf32>
    %22 = arith.addf %16, %21 : vector<32x384xf32>
    %c0_21 = arith.constant 0 : index
    %c0_22 = arith.constant 0 : index
    %23 = vector.load %arg2[%c0_21, %c0_22] : memref<32x1xf32, #tpu.memory_space<vmem>>, vector<32x1xf32>
    %24 = vector.broadcast %23 : vector<32x1xf32> to vector<32x384xf32>
    %25 = arith.addf %22, %24 : vector<32x384xf32>
    %c0_23 = arith.constant 0 : index
    %c0_24 = arith.constant 0 : index
    %c0_25 = arith.constant 0 : index
    %26 = vector.load %arg4[%c0_23, %c0_24, %c0_25] : memref<1x32x384xf32, #tpu.memory_space<vmem>>, vector<1x32x384xf32>
    %27 = vector.shape_cast %26 : vector<1x32x384xf32> to vector<32x384xf32>
    %28 = vector.shape_cast %25 : vector<32x384xf32> to vector<1x32x384xf32>
    tpu.vector_store %arg4[%c0_23, %c0_24, %c0_25], %28 {strides = array<i32>} : memref<1x32x384xf32, #tpu.memory_space<vmem>>, vector<1x32x384xf32>,
    return
  }
  func.func @transform_0(%arg0: i32) -> (i32, i32, i32) {
    %c0_i32 = arith.constant 0 : i32
    %c0_i32_0 = arith.constant 0 : i32
    %c0_i32_1 = arith.constant 0 : i32
    %c0_i32_2 = arith.constant 0 : i32
    return %c0_i32, %c0_i32_0, %c0_i32_1 : i32, i32, i32
  }
  func.func @transform_1(%arg0: i32) -> (i32, i32) {
    %c0_i32 = arith.constant 0 : i32
    %c0_i32_0 = arith.constant 0 : i32
    %c0_i32_1 = arith.constant 0 : i32
    return %c0_i32, %c0_i32_0 : i32, i32
  }
  func.func @transform_2(%arg0: i32) -> (i32, i32, i32) {
    %c0_i32 = arith.constant 0 : i32
    %c0_i32_0 = arith.constant 0 : i32
    %c0_i32_1 = arith.constant 0 : i32
    return %arg0, %c0_i32, %c0_i32_0 : i32, i32, i32
  }
  func.func @transform_3(%arg0: i32) -> (i32, i32, i32) {
    %c0_i32 = arith.constant 0 : i32
    %c0_i32_0 = arith.constant 0 : i32
    %c0_i32_1 = arith.constant 0 : i32
    return %arg0, %c0_i32, %c0_i32_0 : i32, i32, i32
  }
}

</mosaic_0001>

<bundles_post_ra>
// kernel: tile.0
= control target key start
LH: loop header
LB: loop body
LE: loop exit
PB: predicated region body
PF: predicated region fallthrough
CT: control target
= control target key end

     0   :  { %s66_s8 = smov 125   ;;  %s67_s9 = smov 123   ;;  %vm7_vm0 = vcmask 7168   ;;  %s117_s0 = inlined_call_operand.vmem [shape: f32[4,8], index: 0, kind: input, shape index: {}]   ;;  %s118_s1 = inlined_call_operand.vmem [shape: f32[32,1], index: 1, kind: output, shape index: {}]  }
   0x1   :  { %v4_v0 = vld [vmem:[%s117_s0] sm:$0xf]  ;;  %s65_s0 = smov 127   ;;  %s68_s10 = smov 126  }
   0x2   :  { %5 = vst [vmem:[#allocation0] sm:$0xf] %v4_v0  ;;  %s69_s11 = smov 124   ;;  %s70_s12 = smov 122  }
   0x3   :  { %s71_s13 = smov 121  }
   0x9   :  { %v9_v1 = vld [vmem:[#allocation0] sm:$0xf]  }
   0xa   :  { %v21_v2 = vld [vmem:[#allocation0] sm:$0xf]   ;;  %10 = vrot.lane.b32.xlu0 %v9_v1, %s65_s0 }
   0xb   :  { %22 = vrot.lane.b32.xlu1 %v21_v2, %s66_s8  ;;  %v33_v3 = vld [vmem:[#allocation0] sm:$0xf]  }
   0xc   :  { %34 = vrot.lane.b32.xlu2 %v33_v3, %s67_s9  ;;  %v15_v4 = vld [vmem:[#allocation0] sm:$0xf]  }
   0xd   :  { %v27_v5 = vld [vmem:[#allocation0] sm:$0xf]  }
   0xe   :  { %v39_v6 = vld [vmem:[#allocation0] sm:$0xf]  }
   0xf   :  { %v45_v7 = vld [vmem:[#allocation0] sm:$0xf]  }
  0x10   :  { %v6_v8 = vld [vmem:[#allocation0] sm:$0xf]  }
  0x11   :  { %8 = vst.msk [vmem:[%s118_s1] ss:$8 sm:$0xf] %vm7_vm0, %v6_v8  }
  0x12   :  { %16 = vrot.lane.b32.xlu0 %v15_v4, %s68_s10 }
  0x13   :  { %28 = vrot.lane.b32.xlu1 %v27_v5, %s69_s11 }
  0x14   :  { %40 = vrot.lane.b32.xlu2 %v39_v6, %s70_s12 }
  0x1a   :  { %46 = vrot.lane.b32.xlu0 %v45_v7, %s71_s13 }
  0x66   :  { %v35_v9 = vpop.permute.xlu2 %34  }
  0x67   :  { %55 = vst.msk [vmem:[%s118_s1 + $0x5] ss:$8 sm:$0xf] %vm7_vm0, %v35_v9  }
  0x6e   :  { %v41_v10 = vpop.permute.xlu2 %40  }
  0x6f   :  { %56 = vst.msk [vmem:[%s118_s1 + $0x6] ss:$8 sm:$0xf] %vm7_vm0, %v41_v10  }
  0x7c   :  { %v11_v11 = vpop.permute.xlu0 %10  }
  0x7d   :  { %v23_v12 = vpop.permute.xlu1 %22   ;;  %51 = vst.msk [vmem:[%s118_s1 + $0x1] ss:$8 sm:$0xf] %vm7_vm0, %v11_v11  }
  0x7e   :  { %53 = vst.msk [vmem:[%s118_s1 + $0x3] ss:$8 sm:$0xf] %vm7_vm0, %v23_v12  }
  0x84   :  { %v17_v13 = vpop.permute.xlu0 %16  }
  0x85   :  { %v29_v14 = vpop.permute.xlu1 %28   ;;  %52 = vst.msk [vmem:[%s118_s1 + $0x2] ss:$8 sm:$0xf] %vm7_vm0, %v17_v13  }
  0x86   :  { %54 = vst.msk [vmem:[%s118_s1 + $0x4] ss:$8 sm:$0xf] %vm7_vm0, %v29_v14  }
  0x8c   :  { %v47_v15 = vpop.permute.xlu0 %46  }
  0x8d   :  { %57 = vst.msk [vmem:[%s118_s1 + $0x7] ss:$8 sm:$0xf] %vm7_vm0, %v47_v15  }

// kernel: tile.8
= control target key start
LH: loop header
LB: loop body
LE: loop exit
PB: predicated region body
PF: predicated region fallthrough
CT: control target
= control target key end

     0   :  { %2 = vsyncpa [#allocation1], 0  ;;  %s48_s8 = smov [#allocation0]   ;;  %s65_s0 = inlined_call_operand.hbm [shape: f32[8], index: 0, kind: input, shape index: {}]   ;;  %s66_s1 = inlined_call_operand.vmem [shape: f32[4,8], index: 1, kind: output, shape index: {}]  }
   0x1   :  { %s8_s0 = sshll.u32 %s65_s0, 4  ;;  %s10_s9 = sshll.u32 %s48_s8, 4  ;;  %s9_s0 = int_to_ptr.hbm [resolvable:$true] %s8_s0  ;;  %s11_s9 = int_to_ptr.vmem [resolvable:$true] %s10_s9 }
   0x2   :  { %13 = dma.hbm_to_vmem [thread:$0]  %s9_s0, 16, %s11_s9, [#allocation1]  }
   0x3   :  { %46 = dma.done.wait [#allocation1], 16  }
   0x4   :  { %47 = vsyncadd [#allocation1], 4294967280  ;;  %v18_v0 = vld [vmem:[#allocation0] ss:$0 sm:$0xff] }
   0x5   :  { %19 = vst [vmem:[%s66_s1] sm:$0xf] %v18_v0 }
   0x6   :  { %20 = vsyncpa [#allocation1], 1 }

// kernel: upsample_forward.1
= control target key start
LH: loop header
LB: loop body
LE: loop exit
PB: predicated region body
PF: predicated region fallthrough
CT: control target
= control target key end

     0   :  { %s914_s12 = smov 0   ;;  %s1095_s0 = inlined_call_operand.vmem [shape: f32[4,32,8], index: 0, kind: input, shape index: {}]   ;;  %s1096_s1 = inlined_call_operand.vmem [shape: f32[32,1], index: 1, kind: input, shape index: {}]   ;;  %s1097_s2 = inlined_call_operand.vmem [shape: f32[2,8,403], index: 2, kind: input, shape index: {}]   ;;  %s1098_s3 = inlined_call_operand.vmem [shape: f32[2,32,384], index: 3, kind: output, shape index: {}]  }
   0x1 LB: > { %s770_s13 = sadd.s32 4294967295, %s888_s12   ;;  %p774_p0 = scmp.ge.s32.totalorder %s888_s12, 1  ;;  %s888_s12 = sphi %s914_s12, %s13_s12  }
   0x2   : > { %p137_p1 = scmp.lt.s32.totalorder %s888_s12, 3 }
   0x4   : > { %p138_p2 = pnand %p774_p0, %p137_p1 }
   0x5   : > { %p161_p3 = scmp.lt.s32.totalorder (!%p138_p2), %s770_s13, 1  ;;  %s890_s18 = smov (!%p138_p2), 127  }
   0x6   : > { %141 = sbr.rel (%p138_p2) target bundleno = 369 (0x171), region = 32  ;;  %s891_s19 = smov (!%p138_p2), 110  }
   0x7   : > { %s892_s20 = smov (!%p138_p2), 109  }
   0xb   : > { %s1100_s13 = smov (!%p161_p3, %s770_s13), 1  ;;  %vm196_vm0 = vcmask 900096   ;;  %v778_v17 = vld [vmem:[%s1095_s0 + $0x20] sm:$0xff]  ;;  %vm203_vm1 = vcmask 64512   ;;  %vm311_vm2 = vcmask 891904   ;;  %vm430_vm3 = vcmask 1039360  }
   0xc   : > { %s840_s14 = sshll.u32 %s1100_s13, 5  ;;  %v171_v27 = vld [vmem:[%s1095_s0] sm:$0xff]  ;;  %v779_v30 = vld [vmem:[%s1095_s0 + $0x28] sm:$0xff]  ;;  %v780_v36 = vld [vmem:[%s1095_s0 + $0x30] sm:$0xff]  ;;  %v893_v43 = vmov 0   ;;  %s841_s9 = smul.u32 96, %s1100_s13 }
   0xd   : > { %s165_s17 = scalar_lea.vmem %s1097_s2, %s840_s14  ;;  %v172_v35 = vld [vmem:[%s1095_s0 + $0x8] sm:$0xff]  ;;  %v173_v37 = vld [vmem:[%s1095_s0 + $0x10] sm:$0xff]  ;;  %v781_v38 = vld [vmem:[%s1095_s0 + $0x38] sm:$0xff]  ;;  %879 = vset.pattern.permute.xlu1 %v893_v43  ;;  %881 = vset.pattern.permute.xlu0 %v893_v43 }
   0xe   : > { %v928_v0 = vld [vmem:[%s165_s17 + $0x10] sm:$0xff]  ;;  %v178_v1 = vld [vmem:[%s165_s17 + $0x18] sm:$0xff]  ;;  %v175_v2 = vld [vmem:[%s165_s17] sm:$0xff]  ;;  %880 = vset.pattern.permute.xlu2 %v893_v43  ;;  %s1069_s14 = scalar_lea.vmem %s1098_s3, %s841_s9 }
   0xf   : > { %v854_v3 = vpack.i.bf16 %v178_v1, %v928_v0  ;;  %v176_v4 = vld [vmem:[%s165_s17 + $0x8] sm:$0xff]  ;;  %426 = vrot.lane.b32.xlu2 %v928_v0, %s890_s18  ;;  %v174_v39 = vld [vmem:[%s1095_s0 + $0x18] sm:$0xff]  ;;  %v806_v40 = vld [vmem:[%s1095_s0 + $0x40] sm:$0xff] }
  0x10   : > { %v864_v5 = vpack.i.bf16 %v176_v4, %v175_v2  ;;  %v807_v41 = vld [vmem:[%s1095_s0 + $0x48] sm:$0xff]  ;;  %v667_v42 = vld [vmem:[%s1096_s1] sm:$0xff]  ;;  %v808_v44 = vld [vmem:[%s1095_s0 + $0x50] sm:$0xff] }
  0x11   : > { %855 = vrot.lane.b32.xlu0 %v854_v3, %s891_s19  ;;  %v809_v45 = vld [vmem:[%s1095_s0 + $0x58] sm:$0xff]  ;;  %v669_v46 = vld [vmem:[%s1096_s1 + $0x10] sm:$0xff]  ;;  %v822_v47 = vld [vmem:[%s1095_s0 + $0x60] sm:$0xff] }
  0x12   : > { %865 = vrot.lane.b32.xlu1 %v864_v5, %s891_s19  ;;  %v670_v48 = vld [vmem:[%s1096_s1 + $0x18] sm:$0xff]  ;;  %v668_v49 = vld [vmem:[%s1096_s1 + $0x8] sm:$0xff]  ;;  %v824_v51 = vld [vmem:[%s1095_s0 + $0x70] sm:$0xff] }
  0x13   : > { %v823_v50 = vld [vmem:[%s1095_s0 + $0x68] sm:$0xff]  ;;  %v825_v52 = vld [vmem:[%s1095_s0 + $0x78] sm:$0xff] }
  0x17   : > { %875 = vrot.lane.b32.xlu2 %v854_v3, %s892_s20 }
  0x19   : > { %860 = vrot.lane.b32.xlu0 %v864_v5, %s892_s20 }
  0x1a   : > { %870 = vrot.lane.b32.xlu1 %v864_v5, %s890_s18 }
  0x1f   : > { %678 = vperm.xlu2 %880, %v668_v49  }
  0x21   : > { %428 = vrot.lane.b32.xlu0 %v178_v1, %s890_s18 }
  0x22   : > { %673 = vperm.xlu1 %879, %v667_v42  }
  0x29   : > { %683 = vperm.xlu0 %881, %v669_v46  }
  0x2a   : > { %688 = vperm.xlu1 %879, %v670_v48  }
  0x69   : > { %v427_v6 = vpop.permute.xlu2 %426 }
  0x71   : > { %v876_v7 = vpop.permute.xlu2 %875 }
  0x72   : > { %v878_v9 = vunpack.i.h.bf16 %v876_v7  ;;  %v877_v15 = vunpack.i.l.bf16 %v876_v7 }
  0x74   : > { %v314_v20 = vsel %vm311_vm2, %v877_v15, %v878_v9 }
  0x83   : > { %v856_v8 = vpop.permute.xlu0 %855 }
  0x84   : > { %v858_v10 = vunpack.i.h.bf16 %v856_v8  ;;  %v857_v11 = vunpack.i.l.bf16 %v856_v8  ;;  %v866_v12 = vpop.permute.xlu1 %865 }
  0x85   : > { %v868_v13 = vunpack.i.h.bf16 %v866_v12  ;;  %v867_v14 = vunpack.i.l.bf16 %v866_v12 }
  0x86   : > { %v199_v16 = vsel %vm196_vm0, %v857_v11, %v858_v10 }
  0x87   : > { %v197_v18 = vsel %vm196_vm0, %v867_v14, %v868_v13  ;;  %v198_v19 = vsel %vm196_vm0, %v868_v13, %v857_v11  ;;  %289 = vmatpush.msra.mxu2 %v199_v16 }
  0x88   : > { %231 = vmatpush.msra.mxu0 %v197_v18  ;;  %260 = vmatpush.msra.mxu1 %v198_v19 }
  0x89   : > { %782 = vmatmul.msk.f32.vlgmr.msra.gmra.mxu0 %vm203_vm1, %v778_v17  ;;  %786 = vmatmul.msk.f32.vlgmr.msra.gmra.mxu1 %vm203_vm1, %v778_v17 }
  0x8a   : > { %790 = vmatmul.msk.f32.vlgmr.msra.gmra.mxu2 %vm203_vm1, %v778_v17  ;;  %403 = vmatpush.msrb.mxu1 %v314_v20 }
  0x8b   : > { %v861_v21 = vpop.permute.xlu0 %860 }
  0x8c   : > { %583 = vmatpush.msra.mxu1 %v175_v2  ;;  %v871_v22 = vpop.permute.xlu1 %870  ;;  %v863_v23 = vunpack.i.h.bf16 %v861_v21  ;;  %v862_v24 = vunpack.i.l.bf16 %v861_v21 }
  0x8d   : > { %v873_v25 = vunpack.i.h.bf16 %v871_v22  ;;  %v872_v26 = vunpack.i.l.bf16 %v871_v22 }
  0x8e   : > { %v312_v28 = vsel %vm311_vm2, %v862_v24, %v863_v23  ;;  %v313_v29 = vsel %vm311_vm2, %v863_v23, %v877_v15 }
  0x8f   : > { %345 = vmatpush.msra.mxu3 %v312_v28  ;;  %374 = vmatpush.msrb.mxu0 %v313_v29  ;;  %v431_v31 = vsel %vm430_vm3, %v872_v26, %v873_v25  ;;  %v432_v32 = vsel %vm430_vm3, %v873_v25, %v427_v6 }
  0x90   : > { %794 = vmatmul.msk.f32.vlgmr.msra.gmra.mxu3 %vm203_vm1, %v171_v27  ;;  %464 = vmatpush.msrb.mxu2 %v431_v31 }
  0x91   : > { %783 = vmatmul.msk.f32.gmra.mxu0 %vm203_vm1, %v779_v30  ;;  %787 = vmatmul.msk.f32.gmra.mxu1 %vm203_vm1, %v779_v30 }
  0x92   : > { %791 = vmatmul.msk.f32.gmra.mxu2 %vm203_vm1, %v779_v30  ;;  %493 = vmatpush.msrb.mxu3 %v432_v32 }
  0x93   : > { %v429_v33 = vpop.permute.xlu0 %428  ;;  %612 = vmatpush.msra.mxu2 %v176_v4 }
  0x94   : > { %641 = vmatpush.msra.mxu3 %v928_v0  ;;  %v433_v34 = vsel %vm430_vm3, %v427_v6, %v429_v33  ;;  %v674_v23 = vpop.permute.xlu1 %673 }
  0x95   : > { %522 = vmatpush.msra.mxu0 %v433_v34 }
  0x98   : > { %795 = vmatmul.msk.f32.gmra.mxu3 %vm203_vm1, %v172_v35 }
  0x99   : > { %784 = vmatmul.msk.f32.gmra.mxu0 %vm203_vm1, %v780_v36  ;;  %788 = vmatmul.msk.f32.gmra.mxu1 %vm203_vm1, %v780_v36 }
  0x9a   : > { %792 = vmatmul.msk.f32.gmra.mxu2 %vm203_vm1, %v780_v36 }
  0xa0   : > { %796 = vmatmul.msk.f32.gmra.mxu3 %vm203_vm1, %v173_v37 }
  0xa1   : > { %785 = vmatmul.msk.f32.gmra.mxu0 %vm203_vm1, %v781_v38  ;;  %789 = vmatmul.msk.f32.gmra.mxu1 %vm203_vm1, %v781_v38 }
  0xa2   : > { %793 = vmatmul.msk.f32.gmra.mxu2 %vm203_vm1, %v781_v38 }
  0xa8   : > { %797 = vmatmul.msk.f32.gmra.mxu3 %vm203_vm1, %v174_v39 }
  0xa9   : > { %798 = vmatmul.msk.f32.vlgmr.msrb.gmra.mxu0 %vm203_vm1, %v171_v27  ;;  %802 = vmatmul.msk.f32.vlgmr.msrb.gmra.mxu1 %vm203_vm1, %v171_v27 }
  0xaa   : > { %810 = vmatmul.msk.f32.vlgmr.msrb.gmra.mxu2 %vm203_vm1, %v806_v40 }
  0xb0   : > { %814 = vmatmul.msk.f32.vlgmr.msrb.gmra.mxu3 %vm203_vm1, %v806_v40 }
  0xb1   : > { %799 = vmatmul.msk.f32.gmra.mxu0 %vm203_vm1, %v172_v35  ;;  %803 = vmatmul.msk.f32.gmra.mxu1 %vm203_vm1, %v172_v35  ;;  %v679_v35 = vpop.permute.xlu2 %678 }
  0xb2   : > { %811 = vmatmul.msk.f32.gmra.mxu2 %vm203_vm1, %v807_v41 }
  0xb8   : > { %815 = vmatmul.msk.f32.gmra.mxu3 %vm203_vm1, %v807_v41 }
  0xb9   : > { %800 = vmatmul.msk.f32.gmra.mxu0 %vm203_vm1, %v173_v37  ;;  %804 = vmatmul.msk.f32.gmra.mxu1 %vm203_vm1, %v173_v37 }
  0xba   : > { %812 = vmatmul.msk.f32.gmra.mxu2 %vm203_vm1, %v808_v44 }
  0xc0   : > { %816 = vmatmul.msk.f32.gmra.mxu3 %vm203_vm1, %v808_v44 }
  0xc1   : > { %801 = vmatmul.msk.f32.gmra.mxu0 %vm203_vm1, %v174_v39  ;;  %805 = vmatmul.msk.f32.gmra.mxu1 %vm203_vm1, %v174_v39 }
  0xc2   : > { %813 = vmatmul.msk.f32.gmra.mxu2 %vm203_vm1, %v809_v45 }
  0xc8   : > { %817 = vmatmul.msk.f32.gmra.mxu3 %vm203_vm1, %v809_v45 }
  0xc9   : > { %818 = vmatmul.msk.f32.vlgmr.msra.gmra.mxu0 %vm203_vm1, %v806_v40  ;;  %826 = vmatmul.msk.f32.vlgmr.msra.gmra.mxu1 %vm203_vm1, %v822_v47 }
  0xca   : > { %830 = vmatmul.msk.f32.vlgmr.msra.gmra.mxu2 %vm203_vm1, %v822_v47 }
  0xd0   : > { %834 = vmatmul.msk.f32.vlgmr.msra.gmra.mxu3 %vm203_vm1, %v822_v47 }
  0xd1   : > { %819 = vmatmul.msk.f32.gmra.mxu0 %vm203_vm1, %v807_v41  ;;  %827 = vmatmul.msk.f32.gmra.mxu1 %vm203_vm1, %v823_v50 }
  0xd2   : > { %831 = vmatmul.msk.f32.gmra.mxu2 %vm203_vm1, %v823_v50 }
  0xd8   : > { %835 = vmatmul.msk.f32.gmra.mxu3 %vm203_vm1, %v823_v50 }
  0xd9   : > { %820 = vmatmul.msk.f32.gmra.mxu0 %vm203_vm1, %v808_v44  ;;  %828 = vmatmul.msk.f32.gmra.mxu1 %vm203_vm1, %v824_v51 }
  0xda   : > { %832 = vmatmul.msk.f32.gmra.mxu2 %vm203_vm1, %v824_v51 }
  0xe0   : > { %836 = vmatmul.msk.f32.gmra.mxu3 %vm203_vm1, %v824_v51 }
  0xe1   : > { %821 = vmatmul.msk.f32.gmra.mxu0 %vm203_vm1, %v809_v45  ;;  %829 = vmatmul.msk.f32.gmra.mxu1 %vm203_vm1, %v825_v52 }
  0xe2   : > { %833 = vmatmul.msk.f32.gmra.mxu2 %vm203_vm1, %v825_v52 }
  0xe8   : > { %837 = vmatmul.msk.f32.gmra.mxu3 %vm203_vm1, %v825_v52  ;;  %v684_v52 = vpop.permute.xlu0 %683 }
 0x106   : > { %v233_v53 = vpop.f32.mrf.mxu0  ;;  %v262_v54 = vpop.f32.mrf.mxu1 }
 0x10d   : > { %v291_v55 = vpop.f32.mrf.mxu2 }
 0x10e   : > { %v236_v56 = vpop.f32.mrf.mxu0  ;;  %v265_v57 = vpop.f32.mrf.mxu1 }
 0x113   : > { %v347_v58 = vpop.f32.mrf.mxu3 }
 0x114   : > { %v348_v18 = vadd.f32 %v347_v58, %v233_v53 }
 0x115   : > { %v1047_v59 = vpop.f32.mrf.mxu2 }
 0x116   : > { %v239_v60 = vpop.f32.mrf.mxu0  ;;  %v1049_v61 = vpop.f32.mrf.mxu1 }
 0x11b   : > { %v350_v62 = vpop.f32.mrf.mxu3 }
 0x11c   : > { %v351_v28 = vadd.f32 %v350_v62, %v236_v56 }
 0x11d   : > { %v1051_v63 = vpop.f32.mrf.mxu2 }
 0x11e   : > { %v1053_v0 = vpop.f32.mrf.mxu0  ;;  %v1055_v1 = vpop.f32.mrf.mxu1 }
 0x123   : > { %v353_v2 = vpop.f32.mrf.mxu3 }
 0x124   : > { %v354_v42 = vadd.f32 %v353_v2, %v239_v60 }
 0x125   : > { %v1057_v3 = vpop.f32.mrf.mxu2 }
 0x126   : > { %v376_v4 = vpop.f32.mrf.mxu0  ;;  %v405_v5 = vpop.f32.mrf.mxu1 }
 0x127   : > { %v377_v27 = vadd.f32 %v376_v4, %v262_v54  ;;  %v406_v37 = vadd.f32 %v405_v5, %v291_v55 }
 0x12b   : > { %v356_v6 = vpop.f32.mrf.mxu3 }
 0x12c   : > { %v357_v60 = vadd.f32 %v356_v6, %v1053_v0 }
 0x12d   : > { %v466_v7 = vpop.f32.mrf.mxu2 }
 0x12e   : > { %v379_v8 = vpop.f32.mrf.mxu0  ;;  %v408_v9 = vpop.f32.mrf.mxu1  ;;  %v536_v20 = vadd.f32 %v466_v7, %v348_v18 }
 0x12f   : > { %v380_v40 = vadd.f32 %v379_v8, %v265_v57  ;;  %v409_v54 = vadd.f32 %v408_v9, %v1047_v59 }
 0x133   : > { %v495_v10 = vpop.f32.mrf.mxu3 }
 0x134   : > { %v537_v30 = vadd.f32 %v495_v10, %v377_v27 }
 0x135   : > { %v469_v11 = vpop.f32.mrf.mxu2 }
 0x136   : > { %v382_v12 = vpop.f32.mrf.mxu0  ;;  %v1059_v13 = vpop.f32.mrf.mxu1  ;;  %v539_v31 = vadd.f32 %v469_v11, %v351_v28 }
 0x137   : > { %v383_v57 = vadd.f32 %v382_v12, %v1049_v61  ;;  %v689_v11 = vpop.permute.xlu1 %688  ;;  %v412_v61 = vadd.f32 %v1059_v13, %v1051_v63 }
 0x13b   : > { %v498_v14 = vpop.f32.mrf.mxu3 }
 0x13c   : > { %v540_v45 = vadd.f32 %v498_v14, %v380_v40 }
 0x13d   : > { %v472_v15 = vpop.f32.mrf.mxu2 }
 0x13e   : > { %v1061_v16 = vpop.f32.mrf.mxu1  ;;  %v1063_v17 = vpop.f32.mrf.mxu0  ;;  %v542_v47 = vadd.f32 %v472_v15, %v354_v42 }
 0x13f   : > { %v386_v6 = vadd.f32 %v1063_v17, %v1055_v1  ;;  %v415_v63 = vadd.f32 %v1061_v16, %v1057_v3 }
 0x143   : > { %v501_v19 = vpop.f32.mrf.mxu3 }
 0x144   : > { %v543_v2 = vadd.f32 %v501_v19, %v383_v57 }
 0x145   : > { %v475_v21 = vpop.f32.mrf.mxu2 }
 0x146   : > { %v585_v22 = vpop.f32.mrf.mxu1  ;;  %v524_v25 = vpop.f32.mrf.mxu0  ;;  %v545_v5 = vadd.f32 %v475_v21, %v357_v60 }
 0x147   : > { %v655_v24 = vadd.f32 %v585_v22, %v536_v20  ;;  %v538_v41 = vadd.f32 %v524_v25, %v406_v37 }
 0x149   : > { %v691_v26 = vadd.f32 %v674_v23, %v655_v24 }
 0x14b   : > { %703 = vst [vmem:[%s1069_s14] sm:$0xff] %v691_v26  ;;  %v504_v29 = vpop.f32.mrf.mxu3 }
 0x14c   : > { %v546_v19 = vadd.f32 %v504_v29, %v386_v6 }
 0x14d   : > { %v614_v32 = vpop.f32.mrf.mxu2 }
 0x14e   : > { %v656_v33 = vadd.f32 %v614_v32, %v537_v30  ;;  %v588_v34 = vpop.f32.mrf.mxu1  ;;  %v527_v43 = vpop.f32.mrf.mxu0 }
 0x14f   : > { %v658_v36 = vadd.f32 %v588_v34, %v539_v31  ;;  %v541_v58 = vadd.f32 %v527_v43, %v409_v54 }
 0x150   : > { %v692_v38 = vadd.f32 %v674_v23, %v656_v33 }
 0x151   : > { %v694_v39 = vadd.f32 %v679_v35, %v658_v36 }
 0x152   : > { %704 = vst [vmem:[%s1069_s14 + $0x8] sm:$0xff] %v692_v38 }
 0x153   : > { %706 = vst [vmem:[%s1069_s14 + $0x18] sm:$0xff] %v694_v39  ;;  %v643_v44 = vpop.f32.mrf.mxu3 }
 0x154   : > { %v657_v46 = vadd.f32 %v643_v44, %v538_v41 }
 0x155   : > { %v617_v48 = vpop.f32.mrf.mxu2 }
 0x156   : > { %v659_v49 = vadd.f32 %v617_v48, %v540_v45  ;;  %v693_v50 = vadd.f32 %v674_v23, %v657_v46  ;;  %v591_v51 = vpop.f32.mrf.mxu1  ;;  %v530_v7 = vpop.f32.mrf.mxu0 }
 0x157   : > { %v661_v53 = vadd.f32 %v591_v51, %v542_v47  ;;  %v544_v15 = vadd.f32 %v530_v7, %v412_v61 }
 0x158   : > { %v695_v55 = vadd.f32 %v679_v35, %v659_v49  ;;  %705 = vst [vmem:[%s1069_s14 + $0x10] sm:$0xff] %v693_v50 }
 0x159   : > { %v697_v56 = vadd.f32 %v684_v52, %v661_v53 }
 0x15a   : > { %707 = vst [vmem:[%s1069_s14 + $0x20] sm:$0xff] %v695_v55 }
 0x15b   : > { %709 = vst [vmem:[%s1069_s14 + $0x30] sm:$0xff] %v697_v56  ;;  %v646_v62 = vpop.f32.mrf.mxu3 }
 0x15c   : > { %v660_v4 = vadd.f32 %v646_v62, %v541_v58 }
 0x15d   : > { %v620_v8 = vpop.f32.mrf.mxu2 }
 0x15e   : > { %v662_v59 = vadd.f32 %v620_v8, %v543_v2  ;;  %v696_v9 = vadd.f32 %v679_v35, %v660_v4  ;;  %v594_v10 = vpop.f32.mrf.mxu1  ;;  %v533_v24 = vpop.f32.mrf.mxu0 }
 0x15f   : > { %v664_v14 = vadd.f32 %v594_v10, %v545_v5  ;;  %v547_v25 = vadd.f32 %v533_v24, %v415_v63 }
 0x160   : > { %v698_v12 = vadd.f32 %v684_v52, %v662_v59  ;;  %708 = vst [vmem:[%s1069_s14 + $0x28] sm:$0xff] %v696_v9 }
 0x161   : > { %v700_v0 = vadd.f32 %v689_v11, %v664_v14 }
 0x162   : > { %710 = vst [vmem:[%s1069_s14 + $0x38] sm:$0xff] %v698_v12 }
 0x163   : > { %712 = vst [vmem:[%s1069_s14 + $0x48] sm:$0xff] %v700_v0  ;;  %v649_v18 = vpop.f32.mrf.mxu3 }
 0x164   : > { %v663_v20 = vadd.f32 %v649_v18, %v544_v15 }
 0x165   : > { %v623_v21 = vpop.f32.mrf.mxu2 }
 0x166   : > { %v665_v22 = vadd.f32 %v623_v21, %v546_v19  ;;  %v699_v23 = vadd.f32 %v684_v52, %v663_v20 }
 0x168   : > { %v701_v13 = vadd.f32 %v689_v11, %v665_v22  ;;  %711 = vst [vmem:[%s1069_s14 + $0x40] sm:$0xff] %v699_v23 }
 0x16a   : > { %713 = vst [vmem:[%s1069_s14 + $0x50] sm:$0xff] %v701_v13 }
 0x16b   : > { %v652_v26 = vpop.f32.mrf.mxu3 }
 0x16c   : > { %v666_v1 = vadd.f32 %v652_v26, %v547_v25 }
 0x16e   : > { %v702_v17 = vadd.f32 %v689_v11, %v666_v1 }
 0x170   : > { %714 = vst [vmem:[%s1069_s14 + $0x58] sm:$0xff] %v702_v17 }
 0x171 PF: > { %s13_s12 = sadd.s32 1, %s888_s12  }
 0x172   : > { %p10_p4 = scmp.ge.s32.totalorder %s13_s12, 4  }
 0x174   :  { %12 = sbr.rel (!%p10_p4) target bundleno = 1 (0x1), region = 65 }

</bundles_post_ra>
